<compile_context>
chip_gen: v7x
topology: tpu7x:2x2x1
jax: 0.10.0
libtpu: 0.0.40
codegen_flags: <defaults>
</compile_context>

<pallas_src>
import functools

import jax
import jax.numpy as jnp
from jax.experimental import pallas as pl
from jax.experimental.pallas import tpu as pltpu


def _round_up(n, m):
    return ((n + m - 1) // m) * m


def _cdiv(a, b):
    return (a + b - 1) // b


# --------------------------------------------------------------------------- #
# Kernels
# --------------------------------------------------------------------------- #

def _fused_tail_kernel(x_ref, w1_ref, b1_ref, w2_ref, b2_ref, w3_ref, b3_ref,
                       out_ref, *, n_action):
    """Both heads fused into one 3-dot MLP (small H): layer 2 is block-diag,
    layer 3 packs actor lanes [0, A) and the critic value at lane A."""
    dot_dt = w2_ref.dtype  # bf16 fast path (or f32 for the exactness check)

    h = jnp.dot(x_ref[...], w1_ref[...],
                preferred_element_type=jnp.float32) + b1_ref[...]
    h = jnp.maximum(h, 0.0)

    h = jnp.dot(h.astype(dot_dt), w2_ref[...],
                preferred_element_type=jnp.float32) + b2_ref[...]
    h = jnp.maximum(h, 0.0)

    z = jnp.dot(h.astype(dot_dt), w3_ref[...],
                preferred_element_type=jnp.float32) + b3_ref[...]

    # lanes [0, n_action): actor -> 0.2*tanh; lane n_action: critic value (raw).
    lane = jax.lax.broadcasted_iota(jnp.int32, z.shape, dimension=1)
    out_ref[...] = jnp.where(lane < n_action, 0.2 * jnp.tanh(z), z)


def _split_tail_kernel(x_ref, w1_ref, b1_ref,
                       aw2_ref, ab2_ref, cw2_ref, cb2_ref,
                       aw3_ref, ab3_ref, cw3_ref, cb3_ref,
                       out_ref, *, hidden):
    """Large-H variant: layer 1 stays fused (one [in, 2H] dot); layers 2/3 run
    per head so no MXU cycles are spent on block-diag zero halves."""
    dot_dt = aw2_ref.dtype

    h = jnp.dot(x_ref[...], w1_ref[...],
                preferred_element_type=jnp.float32) + b1_ref[...]
    h = jnp.maximum(h, 0.0)

    ha = h[:, :hidden]
    hc = h[:, hidden:]

    ha = jnp.maximum(
        jnp.dot(ha.astype(dot_dt), aw2_ref[...],
                preferred_element_type=jnp.float32) + ab2_ref[...], 0.0)
    hc = jnp.maximum(
        jnp.dot(hc.astype(dot_dt), cw2_ref[...],
                preferred_element_type=jnp.float32) + cb2_ref[...], 0.0)

    za = jnp.dot(ha.astype(dot_dt), aw3_ref[...],
                 preferred_element_type=jnp.float32) + ab3_ref[...]
    zc = jnp.dot(hc.astype(dot_dt), cw3_ref[...],
                 preferred_element_type=jnp.float32) + cb3_ref[...]

    out_ref[...] = jnp.concatenate([0.2 * jnp.tanh(za), zc], axis=1)


# --------------------------------------------------------------------------- #
# Host-side parameter fusion (done ONCE, outside the forward path)
# --------------------------------------------------------------------------- #

def fuse_params(params, *, dot_dtype=jnp.bfloat16, tail_fuse_max_h=128):
    H = params["aw2"].shape[0]
    A = params["aw3"].shape[1]

    # Layer 1 always fuses: [in, 2H] = [actor_w1 | critic_w1].
    w1 = jnp.concatenate([params["aw1"], params["cw1"]], axis=1)
    b1 = jnp.concatenate([params["ab1"], params["cb1"]], axis=1)

    fuse_tail = H <= tail_fuse_max_h
    if fuse_tail:
        # Small H: block-diag layer 2 and packed layer 3 -> 3 dots total.
        w2 = (jnp.zeros((2 * H, 2 * H), jnp.float32)
              .at[:H, :H].set(params["aw2"]).at[H:, H:].set(params["cw2"]))
        b2 = jnp.concatenate([params["ab2"], params["cb2"]], axis=1)
        w3 = (jnp.zeros((2 * H, A + 1), jnp.float32)
              .at[:H, :A].set(params["aw3"]).at[H:, A:].set(params["cw3"]))
        b3 = jnp.concatenate([params["ab3"], params["cb3"]], axis=1)
        tensors = (w1.astype(dot_dtype), b1, w2.astype(dot_dtype), b2,
                   w3.astype(dot_dtype), b3)
    else:
        # Large H: keep layers 2/3 per head (block-diag would ~2x MXU work).
        tensors = (w1.astype(dot_dtype), b1,
                   params["aw2"].astype(dot_dtype), params["ab2"],
                   params["cw2"].astype(dot_dtype), params["cb2"],
                   params["aw3"].astype(dot_dtype), params["ab3"],
                   params["cw3"].astype(dot_dtype), params["cb3"])

    return dict(tensors=tuple(jax.device_put(t) for t in tensors),
                fuse_tail=fuse_tail, hidden=H, n_action=A)


def _resident_spec(a):
    """Whole-array VMEM-resident operand (constant block index). Single-buffered
    when supported: the block never changes, so double buffering is pure waste
    (matters for production-sized weights vs v7x's 64 MiB VMEM)."""
    nd = a.ndim
    idx = lambda *_i, _nd=nd: (0,) * _nd
    try:
        return pl.BlockSpec(a.shape, idx, pipeline_mode=pl.Buffered(1))
    except (TypeError, AttributeError):
        return pl.BlockSpec(a.shape, idx)


# --------------------------------------------------------------------------- #
# Forward
# --------------------------------------------------------------------------- #

@functools.partial(jax.jit,
                   static_argnames=("fuse_tail", "n_action", "hidden", "block_b"))
def _forward(x, tensors, *, fuse_tail, n_action, hidden, block_b):
    B, in_size = x.shape
    n_out = n_action + 1
    dot_dtype = tensors[0].dtype

    # ---- batch tiling --------------------------------------------------------
    # Pad only to the 8-sublane boundary, then split into equal 8-aligned tiles.
    # Small batch -> single tile (minimize ~0.35us/step grid overhead); large
    # batch -> >= 2 tiles (v7x: one per TensorCore), each <= block_b rows.
    bp8 = _round_up(B, 8)
    block_b = _round_up(block_b, 8)
    if bp8 <= block_b:
        n_tiles = 2 if bp8 >= 1024 else 1
    else:
        n_tiles = max(2, _cdiv(bp8, block_b))
    tb = _round_up(_cdiv(bp8, n_tiles), 8)
    bp = tb * n_tiles

    # Cast x to the MXU operand dtype host-side (halves the streamed-input DMA
    # bytes for bf16), then pad to the tiled batch.
    x = x.astype(dot_dtype)
    if bp != B:
        x = jnp.pad(x, ((0, bp - B), (0, 0)))

    if fuse_tail:
        kernel = functools.partial(_fused_tail_kernel, n_action=n_action)
        flops = 2 * bp * (in_size * 2 * hidden
                          + (2 * hidden) * (2 * hidden)
                          + 2 * hidden * n_out)
    else:
        kernel = functools.partial(_split_tail_kernel, hidden=hidden)
        flops = 2 * bp * (in_size * 2 * hidden
                          + 2 * hidden * hidden
                          + hidden * n_action + hidden)

    bytes_accessed = int(x.size * x.dtype.itemsize
                         + sum(t.size * t.dtype.itemsize for t in tensors)
                         + bp * n_out * 4)

    in_specs = [pl.BlockSpec((tb, in_size), lambda i: (i, 0))]   # x: per tile
    in_specs += [_resident_spec(t) for t in tensors]             # weights: resident
    out_spec = pl.BlockSpec((tb, n_out), lambda i: (i, 0))
    # TODO(synk): if a v5e profile shows the narrow (tb, A+1) masked stores
    # (vst.msk) as the binding slot, emit a lane-dense or bf16 packed output.

    packed = pl.pallas_call(
        kernel,
        out_shape=jax.ShapeDtypeStruct((bp, n_out), jnp.float32),
        grid=(n_tiles,),
        in_specs=in_specs,
        out_specs=out_spec,
        compiler_params=pltpu.CompilerParams(
            dimension_semantics=("parallel",)),
        cost_estimate=pl.CostEstimate(
            flops=int(flops),
            transcendentals=int(bp * n_out),
            bytes_accessed=bytes_accessed),
    )(x, *tensors)

    packed = packed[:B]
    return packed[:, :n_action], packed[:, n_action:]


def make_actor_critic(params, *, dot_dtype=jnp.bfloat16, block_b=1024,
                      tail_fuse_max_h=128):
    """Fuse the heads once (hoisted out of the per-call path) and return a
    jitted forward: x -> (action, value)."""
    fused = fuse_params(params, dot_dtype=dot_dtype,
                        tail_fuse_max_h=tail_fuse_max_h)
    tensors = fused["tensors"]

    def forward(x):
        return _forward(x, tensors,
                        fuse_tail=fused["fuse_tail"],
                        n_action=fused["n_action"],
                        hidden=fused["hidden"],
                        block_b=block_b)

    return forward


# --------------------------------------------------------------------------- #
# Init + pure-JAX reference (PyTorch forward semantics)
# --------------------------------------------------------------------------- #

def init_params(key, input_size, hidden_size, output_size):
    """Deterministic synthetic parameters (weights stored as [in, out])."""
    keys = jax.random.split(key, 12)

    def lin(kw, kb, fan_in, fan_out):
        bound = 1.0 / jnp.sqrt(fan_in)
        w = jax.random.uniform(kw, (fan_in, fan_out), jnp.float32, -bound, bound)
        b = jax.random.uniform(kb, (1, fan_out), jnp.float32, -bound, bound)
        return w, b

    aw1, ab1 = lin(keys[0], keys[1], input_size, hidden_size)
    aw2, ab2 = lin(keys[2], keys[3], hidden_size, hidden_size)
    aw3, ab3 = lin(keys[4], keys[5], hidden_size, output_size)
    cw1, cb1 = lin(keys[6], keys[7], input_size, hidden_size)
    cw2, cb2 = lin(keys[8], keys[9], hidden_size, hidden_size)
    cw3, cb3 = lin(keys[10], keys[11], hidden_size, 1)

    return dict(aw1=aw1, ab1=ab1, aw2=aw2, ab2=ab2, aw3=aw3, ab3=ab3,
                cw1=cw1, cb1=cb1, cw2=cw2, cb2=cb2, cw3=cw3, cb3=cb3)


def actor_critic_reference(x, p):
    h = jnp.maximum(x @ p["aw1"] + p["ab1"], 0.0)
    h = jnp.maximum(h @ p["aw2"] + p["ab2"], 0.0)
    action = 0.2 * jnp.tanh(h @ p["aw3"] + p["ab3"])
    g = jnp.maximum(x @ p["cw1"] + p["cb1"], 0.0)
    g = jnp.maximum(g @ p["cw2"] + p["cb2"], 0.0)
    value = g @ p["cw3"] + p["cb3"]
    return action, value


if __name__ == "__main__":
    key = jax.random.PRNGKey(0)
    kp, kx, kp2, kx2, kx3 = jax.random.split(key, 5)

    # ---- config 1: small H (fused-tail kernel path), batch = 8 ---------------
    input_size, hidden_size, output_size = 32, 32, 4
    batch = 8
    params = init_params(kp, input_size, hidden_size, output_size)
    x = jax.random.normal(kx, (batch, input_size), jnp.float32)
    ref_action, ref_value = actor_critic_reference(x, params)

    # 1a) Exactness: f32 MXU operands (block-diag zeros are exactly neutral).
    fwd_f32 = make_actor_critic(params, dot_dtype=jnp.float32)
    a32, v32 = fwd_f32(x)
    jax.block_until_ready((a32, v32))
    assert a32.shape == (batch, output_size) and v32.shape == (batch, 1)
    assert jnp.allclose(a32, ref_action, atol=1e-5, rtol=1e-5)
    assert jnp.allclose(v32, ref_value, atol=1e-5, rtol=1e-5)

    # 1b) Fast path: bf16 MXU operands, f32 accumulation + f32 elementwise.
    fwd_bf16 = make_actor_critic(params, dot_dtype=jnp.bfloat16)
    a16, v16 = fwd_bf16(x)
    jax.block_until_ready((a16, v16))
    assert jnp.allclose(a16, ref_action, atol=5e-2, rtol=5e-2)
    assert jnp.allclose(v16, ref_value, atol=5e-2, rtol=5e-2)

    # 1c) Multi-tile grid + 8-row-aligned padding policy (B=200, block_b=64
    #     -> 4 tiles of 56 rows, pad 200->224 only).
    fwd_tiled = make_actor_critic(params, dot_dtype=jnp.bfloat16, block_b=64)
    xb = jax.random.normal(kx2, (200, input_size), jnp.float32)
    ref_ab, ref_vb = actor_critic_reference(xb, params)
    ab, vb = fwd_tiled(xb)
    jax.block_until_ready((ab, vb))
    assert ab.shape == (200, output_size) and vb.shape == (200, 1)
    assert jnp.allclose(ab, ref_ab, atol=5e-2, rtol=5e-2)
    assert jnp.allclose(vb, ref_vb, atol=5e-2, rtol=5e-2)

    # ---- config 2: H > 128 -> unfused (split-tail) kernel path ---------------
    hidden_big = 256
    params2 = init_params(kp2, input_size, hidden_big, output_size)
    x2 = jax.random.normal(kx3, (16, input_size), jnp.float32)
    ref_a2, ref_v2 = actor_critic_reference(x2, params2)
    fwd_big = make_actor_critic(params2, dot_dtype=jnp.bfloat16)
    a2, v2 = fwd_big(x2)
    jax.block_until_ready((a2, v2))
    assert a2.shape == (16, output_size) and v2.shape == (16, 1)
    assert jnp.allclose(a2, ref_a2, atol=5e-2, rtol=5e-2)
    assert jnp.allclose(v2, ref_v2, atol=5e-2, rtol=5e-2)

    print("KERNEL_OK")
</pallas_src>

<mosaic_0001>
module attributes {stable_mosaic.version = 11 : i64} {
  func.func @_fused_tail_kernel(%arg0: i32, %arg1: memref<8x32xf32, #tpu.memory_space<vmem>>, %arg2: memref<32x64xf32, #tpu.memory_space<vmem>>, %arg3: memref<1x64xf32, #tpu.memory_space<vmem>>, %arg4: memref<64x64xf32, #tpu.memory_space<vmem>>, %arg5: memref<1x64xf32, #tpu.memory_space<vmem>>, %arg6: memref<64x5xf32, #tpu.memory_space<vmem>>, %arg7: memref<1x5xf32, #tpu.memory_space<vmem>>, %arg8: memref<8x5xf32, #tpu.memory_space<vmem>>) attributes {dimension_semantics = [#tpu.dimension_semantics<parallel>], iteration_bounds = array<i64: 1>, scalar_prefetch = 0 : i64, scratch_operands = 0 : i64, tpu.core_type = #tpu.core_type<tc>, window_params = [{transform_indices = @transform_0, window_bounds = array<i64: 8, 32>}, {pipeline_mode = #tpu.pipeline_mode<synchronous>, transform_indices = @transform_1, window_bounds = array<i64: 32, 64>}, {pipeline_mode = #tpu.pipeline_mode<synchronous>, transform_indices = @transform_2, window_bounds = array<i64: 1, 64>}, {pipeline_mode = #tpu.pipeline_mode<synchronous>, transform_indices = @transform_3, window_bounds = array<i64: 64, 64>}, {pipeline_mode = #tpu.pipeline_mode<synchronous>, transform_indices = @transform_4, window_bounds = array<i64: 1, 64>}, {pipeline_mode = #tpu.pipeline_mode<synchronous>, transform_indices = @transform_5, window_bounds = array<i64: 64, 5>}, {pipeline_mode = #tpu.pipeline_mode<synchronous>, transform_indices = @transform_6, window_bounds = array<i64: 1, 5>}, {transform_indices = @transform_7, window_bounds = array<i64: 8, 5>}]} {
    %c0 = arith.constant 0 : index
    %c0_0 = arith.constant 0 : index
    %0 = vector.load %arg1[%c0, %c0_0] : memref<8x32xf32, #tpu.memory_space<vmem>>, vector<8x32xf32>
    %c0_1 = arith.constant 0 : index
    %c0_2 = arith.constant 0 : index
    %1 = vector.load %arg2[%c0_1, %c0_2] : memref<32x64xf32, #tpu.memory_space<vmem>>, vector<32x64xf32>
    %cst = arith.constant dense<0.000000e+00> : vector<8x64xf32>
    %2 = tpu.matmul %0, %1, %cst {dimension_numbers = #tpu.dot_dimension_numbers<[1], [0], [0], [1], [0, 0, 1, 1], [], []>} : vector<8x32xf32>, vector<32x64xf32>, vector<8x64xf32> -> vector<8x64xf32>
    %c0_3 = arith.constant 0 : index
    %c0_4 = arith.constant 0 : index
    %3 = vector.load %arg3[%c0_3, %c0_4] : memref<1x64xf32, #tpu.memory_space<vmem>>, vector<1x64xf32>
    %4 = vector.broadcast %3 : vector<1x64xf32> to vector<8x64xf32>
    %5 = arith.addf %2, %4 : vector<8x64xf32>
    %cst_5 = arith.constant 0.000000e+00 : f32
    %6 = vector.broadcast %cst_5 : f32 to vector<8x64xf32>
    %7 = arith.maximumf %5, %6 : vector<8x64xf32>
    %c0_6 = arith.constant 0 : index
    %c0_7 = arith.constant 0 : index
    %8 = vector.load %arg4[%c0_6, %c0_7] : memref<64x64xf32, #tpu.memory_space<vmem>>, vector<64x64xf32>
    %cst_8 = arith.constant dense<0.000000e+00> : vector<8x64xf32>
    %9 = tpu.matmul %7, %8, %cst_8 {dimension_numbers = #tpu.dot_dimension_numbers<[1], [0], [0], [1], [0, 0, 1, 1], [], []>} : vector<8x64xf32>, vector<64x64xf32>, vector<8x64xf32> -> vector<8x64xf32>
    %c0_9 = arith.constant 0 : index
    %c0_10 = arith.constant 0 : index
    %10 = vector.load %arg5[%c0_9, %c0_10] : memref<1x64xf32, #tpu.memory_space<vmem>>, vector<1x64xf32>
    %11 = vector.broadcast %10 : vector<1x64xf32> to vector<8x64xf32>
    %12 = arith.addf %9, %11 : vector<8x64xf32>
    %cst_11 = arith.constant 0.000000e+00 : f32
    %13 = vector.broadcast %cst_11 : f32 to vector<8x64xf32>
    %14 = arith.maximumf %12, %13 : vector<8x64xf32>
    %c0_12 = arith.constant 0 : index
    %c0_13 = arith.constant 0 : index
    %15 = vector.load %arg6[%c0_12, %c0_13] : memref<64x5xf32, #tpu.memory_space<vmem>>, vector<64x5xf32>
    %cst_14 = arith.constant dense<0.000000e+00> : vector<8x5xf32>
    %16 = tpu.matmul %14, %15, %cst_14 {dimension_numbers = #tpu.dot_dimension_numbers<[1], [0], [0], [1], [0, 0, 1, 1], [], []>} : vector<8x64xf32>, vector<64x5xf32>, vector<8x5xf32> -> vector<8x5xf32>
    %c0_15 = arith.constant 0 : index
    %c0_16 = arith.constant 0 : index
    %17 = vector.load %arg7[%c0_15, %c0_16] : memref<1x5xf32, #tpu.memory_space<vmem>>, vector<1x5xf32>
    %18 = vector.broadcast %17 : vector<1x5xf32> to vector<8x5xf32>
    %19 = arith.addf %16, %18 : vector<8x5xf32>
    %20 = tpu.iota {dimensions = array<i32: 1>} : vector<8x5xi32>
    %c4_i32 = arith.constant 4 : i32
    %21 = vector.broadcast %c4_i32 : i32 to vector<8x5xi32>
    %22 = arith.cmpi slt, %20, %21 : vector<8x5xi32>
    %23 = math.tanh %19 : vector<8x5xf32>
    %cst_17 = arith.constant 2.000000e-01 : f32
    %24 = vector.broadcast %cst_17 : f32 to vector<8x5xf32>
    %25 = arith.mulf %24, %23 : vector<8x5xf32>
    %26 = arith.select %22, %25, %19 : vector<8x5xi1>, vector<8x5xf32>
    %c0_18 = arith.constant 0 : index
    %c0_19 = arith.constant 0 : index
    %27 = vector.load %arg8[%c0_18, %c0_19] : memref<8x5xf32, #tpu.memory_space<vmem>>, vector<8x5xf32>
    tpu.vector_store %arg8[%c0_18, %c0_19], %26 {strides = array<i32>} : memref<8x5xf32, #tpu.memory_space<vmem>>, vector<8x5xf32>,
    return
  }
  func.func @transform_0(%arg0: i32) -> (i32, i32) {
    %c0_i32 = arith.constant 0 : i32
    %c0_i32_0 = arith.constant 0 : i32
    return %arg0, %c0_i32 : i32, i32
  }
  func.func @transform_1(%arg0: i32) -> (i32, i32) {
    %c0_i32 = arith.constant 0 : i32
    %c0_i32_0 = arith.constant 0 : i32
    %c0_i32_1 = arith.constant 0 : i32
    return %c0_i32, %c0_i32_0 : i32, i32
  }
  func.func @transform_2(%arg0: i32) -> (i32, i32) {
    %c0_i32 = arith.constant 0 : i32
    %c0_i32_0 = arith.constant 0 : i32
    %c0_i32_1 = arith.constant 0 : i32
    return %c0_i32, %c0_i32_0 : i32, i32
  }
  func.func @transform_3(%arg0: i32) -> (i32, i32) {
    %c0_i32 = arith.constant 0 : i32
    %c0_i32_0 = arith.constant 0 : i32
    %c0_i32_1 = arith.constant 0 : i32
    return %c0_i32, %c0_i32_0 : i32, i32
  }
  func.func @transform_4(%arg0: i32) -> (i32, i32) {
    %c0_i32 = arith.constant 0 : i32
    %c0_i32_0 = arith.constant 0 : i32
    %c0_i32_1 = arith.constant 0 : i32
    return %c0_i32, %c0_i32_0 : i32, i32
  }
  func.func @transform_5(%arg0: i32) -> (i32, i32) {
    %c0_i32 = arith.constant 0 : i32
    %c0_i32_0 = arith.constant 0 : i32
    %c0_i32_1 = arith.constant 0 : i32
    return %c0_i32, %c0_i32_0 : i32, i32
  }
  func.func @transform_6(%arg0: i32) -> (i32, i32) {
    %c0_i32 = arith.constant 0 : i32
    %c0_i32_0 = arith.constant 0 : i32
    %c0_i32_1 = arith.constant 0 : i32
    return %c0_i32, %c0_i32_0 : i32, i32
  }
  func.func @transform_7(%arg0: i32) -> (i32, i32) {
    %c0_i32 = arith.constant 0 : i32
    %c0_i32_0 = arith.constant 0 : i32
    return %arg0, %c0_i32 : i32, i32
  }
}

</mosaic_0001>

<bundles_post_ra>
// kernel: _forward.1
= control target key start
LH: loop header
LB: loop body
LE: loop exit
PB: predicated region body
PF: predicated region fallthrough
CT: control target
= control target key end

     0   :  { %12 = vsyncpa [#allocation3], 0  ;;  %s458_s24 = smov [#allocation2]   ;;  %s582_s0 = inlined_call_operand.vmem [shape: f32[8,32], index: 0, kind: input, shape index: {}]   ;;  %s583_s1 = inlined_call_operand.hbm [shape: f32[32,64], index: 1, kind: input, shape index: {}]   ;;  %s584_s2 = inlined_call_operand.vmem [shape: f32[1,64], index: 2, kind: input, shape index: {}]   ;;  %s585_s3 = inlined_call_operand.vmem [shape: f32[64,64], index: 3, kind: input, shape index: {}]   ;;  %s586_s4 = inlined_call_operand.vmem [shape: f32[1,64], index: 4, kind: input, shape index: {}]   ;;  %s587_s5 = inlined_call_operand.vmem [shape: f32[64,5], index: 5, kind: input, shape index: {}]   ;;  %s588_s6 = inlined_call_operand.vmem [shape: f32[1,5], index: 6, kind: input, shape index: {}]   ;;  %s589_s7 = inlined_call_operand.vmem [shape: f32[8,5], index: 7, kind: output, shape index: {}]  }
   0x1   :  { %s20_s25 = sshll.u32 %s458_s24, 4  ;;  %s434_s28 = scalar_lea.hbm %s583_s1, 512  ;;  %s21_s25 = int_to_ptr.vmem [resolvable:$true] %s20_s25 }
   0x2   :  { %p435_p0 = scmp.ne.s32.totalorder %s583_s1, %s434_s28  ;;  %p438_p1 = scmp.lt.u32.totalorder %s434_s28, %s583_s1 }
   0x4   :  { %p440_p2 = pnand %p438_p1, %p435_p0 }
   0x6   :  { %443 = shalt.err (!%p440_p2)
}
   0x7   :  { %s444_s10 = scalar_lea.vmem %s21_s25, 512  ;;  %p449_p4 = scmp.lt.s32.totalorder %s21_s25, %s21_s25 }
   0x8   :  { %p445_p3 = scmp.ne.s32.totalorder %s21_s25, %s444_s10  ;;  %p450_p5 = scmp.lt.s32.totalorder %s444_s10, %s444_s10 }
   0xa   :  { %p451_p6 = por %p450_p5, %p449_p4 }
   0xc   :  { %p452_p7 = pnand %p451_p6, %p445_p3 }
   0xe   :  { %455 = shalt.err (!%p452_p7)
}
   0xf   :  { %s459_s11 = smov 128   ;;  %s460_s12 = smov 8  }
  0x10   :  { %26 = dma.hbm_to_vmem [thread:$0]  %s583_s1, 512, %s21_s25, [#allocation3], %s459_s11, %s459_s11, %s460_s12  }
  0x11   :  { %456 = dma.done.wait [#allocation3], 512  }
  0x12   :  { %457 = vsyncadd [#allocation3], 4294966784  ;;  %v461_v0 = vmov 0.0|0.0   ;;  %vm462_vm0 = vmmov 0   ;;  %v463_v1 = vmov 0.0   ;;  %v41_v2 = vld [vmem:[#allocation2] sm:$0xff]  ;;  %v305_v47 = vlaneseq }
  0x13   :  { %396 = vmatprep.subr.bf16.mxu0 %v461_v0  ;;  %355 = vmatprep.mubr.msk.f32.mxu0 %vm462_vm0, %v463_v1  ;;  %v42_v3 = vld [vmem:[#allocation2 + $0x8] sm:$0xff]  ;;  %v43_v4 = vld [vmem:[#allocation2 + $0x10] sm:$0xff]  ;;  %v44_v6 = vld [vmem:[#allocation2 + $0x18] sm:$0xff]  ;;  %vm52_vm1 = vcmask 261120   ;;  %vm142_vm2 = vcmask 523264   ;;  %vm311_vm4 = vcmask 39936  }
  0x14   :  { %402 = vmatprep.subr.bf16.mxu1 %v461_v0  ;;  %374 = vmatprep.mubr.msk.f32.mxu1 %vm462_vm0, %v463_v1  ;;  %v397_v5 = vpack.c.bf16 %v42_v3, %v41_v2  ;;  %v127_v7 = vld [vmem:[%s585_s3] sm:$0xff]  ;;  %v128_v8 = vld [vmem:[%s585_s3 + $0x8] sm:$0xff]  ;;  %v129_v9 = vld [vmem:[%s585_s3 + $0x10] sm:$0xff]  ;;  %v400_v11 = vpack.c.bf16 %v44_v6, %v43_v4  ;;  %v306_v48 = vand.u32 127, %v305_v47 }
  0x15   :  { %v130_v10 = vld [vmem:[%s585_s3 + $0x18] sm:$0xff]  ;;  %v403_v12 = vpack.c.bf16 %v128_v8, %v127_v7  ;;  %v131_v14 = vld [vmem:[%s585_s3 + $0x20] sm:$0xff]  ;;  %v132_v15 = vld [vmem:[%s585_s3 + $0x28] sm:$0xff] }
  0x16   :  { %398 = vmatpush3.bf16.msra.mxu0 %v397_v5  ;;  %v406_v13 = vpack.c.bf16 %v130_v10, %v129_v9  ;;  %v40_v16 = vld [vmem:[%s582_s0] sm:$0xff]  ;;  %v409_v17 = vpack.c.bf16 %v132_v15, %v131_v14  ;;  %v133_v18 = vld [vmem:[%s585_s3 + $0x30] sm:$0xff]  ;;  %v134_v19 = vld [vmem:[%s585_s3 + $0x38] sm:$0xff]  ;;  %vm307_vm3 = vcmp.lt.s32.totalorder %v306_v48, 4 }
  0x17   :  { %399 = vmatprep.subr.bf16.mxu0 %v461_v0  ;;  %404 = vmatpush3.bf16.msra.mxu1 %v403_v12  ;;  %v412_v20 = vpack.c.bf16 %v134_v19, %v133_v18  ;;  %v217_v21 = vld [vmem:[%s587_s5] sm:$0xff]  ;;  %v218_v22 = vld [vmem:[%s587_s5 + $0x8] sm:$0xff]  ;;  %v219_v23 = vld [vmem:[%s587_s5 + $0x10] sm:$0xff] }
  0x18   :  { %405 = vmatprep.subr.bf16.mxu1 %v461_v0  ;;  %v415_v24 = vpack.c.bf16 %v218_v22, %v217_v21  ;;  %v220_v25 = vld [vmem:[%s587_s5 + $0x18] sm:$0xff]  ;;  %v221_v27 = vld [vmem:[%s587_s5 + $0x20] sm:$0xff]  ;;  %v222_v28 = vld [vmem:[%s587_s5 + $0x28] sm:$0xff] }
  0x19   :  { %v418_v26 = vpack.c.bf16 %v220_v25, %v219_v23  ;;  %v421_v29 = vpack.c.bf16 %v222_v28, %v221_v27  ;;  %v318_v30 = vld [vmem:[%s584_s2] ss:$0 sm:$0xff]  ;;  %v223_v35 = vld [vmem:[%s587_s5 + $0x30] sm:$0xff]  ;;  %v224_v36 = vld [vmem:[%s587_s5 + $0x38] sm:$0xff] }
  0x1a   :  { %401 = vmatpush3.bf16.msra.mxu0 %v400_v11  ;;  %v424_v37 = vpack.c.bf16 %v224_v36, %v223_v35  ;;  %v320_v38 = vld [vmem:[%s586_s4] ss:$0 sm:$0xff] }
  0x1b   :  { %414 = vmatprep.subr.bf16.mxu0 %v461_v0  ;;  %407 = vmatpush3.bf16.msra.mxu1 %v406_v13  ;;  %v322_v43 = vld [vmem:[%s588_s6] ss:$0 sm:$0xff] }
  0x1c   :  { %408 = vmatprep.subr.bf16.mxu1 %v461_v0 }
  0x1d   :  { %356 = vmatmul.mubr.msk.f32.vlgmr.msra.gmra.mrb[0].mxu0 %vm52_vm1, %v40_v16 }
  0x1e   :  { %393 = vmatprep.mubr.msk.f32.mxu0 %vm462_vm0, %v463_v1  ;;  %416 = vmatpush3.bf16.msra.mxu0 %v415_v24 }
  0x1f   :  { %410 = vmatpush3.bf16.msra.mxu1 %v409_v17  ;;  %417 = vmatprep.subr.bf16.mxu0 %v461_v0 }
  0x20   :  { %411 = vmatprep.subr.bf16.mxu1 %v461_v0 }
  0x22   :  { %419 = vmatpush3.bf16.msra.mxu0 %v418_v26 }
  0x23   :  { %413 = vmatpush3.bf16.msra.mxu1 %v412_v20  ;;  %420 = vmatprep.subr.bf16.mxu0 %v461_v0 }
  0x26   :  { %422 = vmatpush3.bf16.msra.mxu0 %v421_v29 }
  0x27   :  { %423 = vmatprep.subr.bf16.mxu0 %v461_v0 }
  0x2a   :  { %425 = vmatpush3.bf16.msra.mxu0 %v424_v37 }
  0xf0   :  { %v122_v31 = vpop.f32.mrb[0].mxu0 }
  0xf1   :  { %v123_v32 = vadd.f32 %v318_v30, %v122_v31  ;;  %v357_v33 = vpop.f32.mrb[1].mxu0 }
  0xf3   :  { %v126_v34 = vmax.f32 %v123_v32, 0.0 }
  0xf5   :  { %375 = vmatmul.mubr.msk.f32.vlgmr.msra.gmra.mrb[0].mxu1 %vm142_vm2, %v126_v34 }
 0x1c8   :  { %v212_v39 = vpop.f32.mrb[0].mxu1 }
 0x1c9   :  { %v213_v40 = vadd.f32 %v320_v38, %v212_v39  ;;  %v376_v41 = vpop.f32.mrb[1].mxu1 }
 0x1cb   :  { %v216_v42 = vmax.f32 %v213_v40, 0.0 }
 0x1cd   :  { %394 = vmatmul.mubr.msk.f32.vlgmr.msra.gmra.mrb[2].mxu0 %vm142_vm2, %v216_v42 }
 0x2a0   :  { %v301_v44 = vpop.f32.mrb[2].mxu0 }
 0x2a1   :  { %v302_v45 = vadd.f32 %v322_v43, %v301_v44  ;;  %v395_v46 = vpop.f32.mrb[3].mxu0 }
 0x2a3   :  { %432 = vtanh.f32 %v302_v45 }
 0x2ad   :  { %v433_v49 = vpop.eup %432 }
 0x2ae   :  { %v309_v50 = vmul.f32 0.2, %v433_v49 }
 0x2b0   :  { %v310_v51 = vsel %vm307_vm3, %v309_v50, %v302_v45 }
 0x2b1   :  { %312 = vst.msk [vmem:[%s589_s7] sm:$0xff] %vm311_vm4, %v310_v51 }
 0x2b2   :  { %317 = vsyncpa [#allocation3], 1 }

</bundles_post_ra>
